<compile_context>
chip_gen: v6e
topology: v6e:2x2x1
jax: 0.10.0
libtpu: 0.0.40
codegen_flags: <defaults>
</compile_context>

<pallas_src>
import jax
import jax.numpy as jnp
from jax.experimental import pallas as pl
from jax.experimental.pallas import tpu as pltpu

_LANES = 128      # vreg lane width
_SUBLANES = 8     # f32 sublane tile


def _hbm_copy_kernel(x_hbm, o_hbm, sem):
    # Single direct HBM->HBM DMA: no VMEM staging, near-zero TensorCore work.
    cp = pltpu.make_async_copy(x_hbm, o_hbm, sem)
    cp.start()
    cp.wait()


def _identity_copy(x: jax.Array) -> jax.Array:
    nbytes = x.size * x.dtype.itemsize
    return pl.pallas_call(
        _hbm_copy_kernel,
        out_shape=jax.ShapeDtypeStruct(x.shape, x.dtype),
        in_specs=[pl.BlockSpec(memory_space=pl.ANY)],
        out_specs=pl.BlockSpec(memory_space=pl.ANY),
        scratch_shapes=[pltpu.SemaphoreType.DMA(())],
        # Accurate mem-bound cost hint: read + write of the full array.
        cost_estimate=pl.CostEstimate(
            flops=0, transcendentals=0, bytes_accessed=2 * nbytes),
    )(x)


@jax.jit
def _passthrough_impl(x_nchw: jax.Array) -> jax.Array:
    """Identity pass-through via a direct HBM->HBM DMA (no VMEM round trip)."""
    orig_shape = x_nchw.shape
    n = x_nchw.size
    if n % (_SUBLANES * _LANES) == 0:
        # Lane-dense, (8,128)-aligned slab.  A contiguous reshape is a free
        # bitcast in XLA -- unlike the previous pad/slice wrapper, this adds
        # zero extra HBM traffic.
        x2d = x_nchw.reshape(n // _LANES, _LANES)
        return _identity_copy(x2d).reshape(orig_shape)
    # Ragged sizes: DMA the array in its original shape (still a single
    # full-ref HBM->HBM copy; no padding, no trailing slice).
    return _identity_copy(x_nchw)


class CnnEncoder:
    """JAX/Pallas mirror of the (empty) PyTorch CnnEncoder."""

    def __init__(self):
        # The PyTorch __init__ registers no parameters; nothing to initialize.
        pass

    def forward(self):
        # Exactly mirrors `def forward(self): pass` -> returns None.
        # Per perf review: the optimal implementation moves no data at all.
        return None

    # Extra helper (not in the PyTorch API) that routes a tensor through the
    # no-op Pallas kernel so the kernel path is actually exercised on TPU.
    def forward_passthrough(self, x_nchw: jax.Array) -> jax.Array:
        return _passthrough_impl(x_nchw)


if __name__ == "__main__":
    key = jax.random.PRNGKey(0)
    # Small NCHW input consistent with what a CNN encoder would consume.
    x = jax.random.normal(key, (2, 4, 16, 16), dtype=jnp.float32)

    enc = CnnEncoder()

    # Faithful forward(): no args, returns None (matches PyTorch semantics).
    out = enc.forward()
    assert out is None

    # Exercise the Pallas kernel path (direct HBM->HBM identity copy).
    y = enc.forward_passthrough(x)
    y = jax.block_until_ready(y)
    assert y.shape == x.shape and y.dtype == x.dtype
    assert bool(jnp.allclose(y, x))

    print("KERNEL_OK")
</pallas_src>

<mosaic_0001>
module attributes {stable_mosaic.version = 11 : i64} {
  func.func @_hbm_copy_kernel(%arg0: memref<16x128xf32, #tpu.memory_space<any>>, %arg1: memref<16x128xf32, #tpu.memory_space<any>>, %arg2: memref<!tpu.dma_semaphore, #tpu.memory_space<semaphore_mem>>) attributes {dimension_semantics = [], scalar_prefetch = 0 : i64, scratch_operands = 1 : i64, tpu.core_type = #tpu.core_type<tc>} {
    tpu.enqueue_dma source(%arg0 : memref<16x128xf32, #tpu.memory_space<any>>) target(%arg1 : memref<16x128xf32, #tpu.memory_space<any>>) target_semaphore(%arg2 : memref<!tpu.dma_semaphore, #tpu.memory_space<semaphore_mem>>)
    tpu.wait_dma2 semaphore(%arg2 : memref<!tpu.dma_semaphore, #tpu.memory_space<semaphore_mem>>) src(%arg0 : memref<16x128xf32, #tpu.memory_space<any>>) dst(%arg1 : memref<16x128xf32, #tpu.memory_space<any>>)
    return
  }
}

</mosaic_0001>

<bundles_post_ra>
// kernel: _passthrough_impl.1
= control target key start
LH: loop header
LB: loop body
LE: loop exit
PB: predicated region body
PF: predicated region fallthrough
CT: control target
= control target key end

     0   :  { %s93_s0 = inlined_call_operand.vmem [shape: f32[16,128], index: 0, kind: input, shape index: {}]   ;;  %s94_s1 = inlined_call_operand.vmem [shape: f32[16,128], index: 1, kind: output, shape index: {}]  }
   0x1   :  { %v39_v0 = vld [vmem:[%s93_s0] sm:$0xff]  ;;  %v41_v1 = vld [vmem:[%s93_s0 + $0x8] sm:$0xff] }
   0x2   :  { %40 = vst [vmem:[%s94_s1] sm:$0xff] %v39_v0  ;;  %42 = vst [vmem:[%s94_s1 + $0x8] sm:$0xff] %v41_v1 }
   0x3   :  { %50 = vsyncadd [#allocation2], 256 }
   0x4   :  { %69 = dma.done.wait [#allocation2], 256 }
   0x5   :  { %70 = vsyncadd [#allocation2], 4294967040 }
   0x6   :  { %54 = vsyncmov [#allocation2] }
   0x9   :  { %s55_s14 = vpop.sfrf %54 }
   0xa   :  { %p68_p0 = scmp.ne.s32.totalorder %s55_s14, 0 }
   0xc   :  { %59 = shalt.err (%p68_p0)  }

</bundles_post_ra>
